<compile_context>
chip_gen: v5e
topology: v5e:2x2
jax: 0.10.0
libtpu: 0.0.40
codegen_flags: <defaults>
</compile_context>

<pallas_src>
import functools

import jax
import jax.numpy as jnp
from jax.experimental import pallas as pl
from jax.experimental.pallas import tpu as pltpu

LANE = 128
VMEM_TILE_BUDGET = 24 * 1024 * 1024      # what we budget tiles against
VMEM_LIMIT_BYTES = 32 * 1024 * 1024      # explicit scoped-VMEM limit (all gens)


# ----------------------------- Pallas kernels ------------------------------

def _partial_stats(acc):
    # Rows 0/1 = per-channel sum / sum-of-squares of this row tile; rows 2..7
    # are zero padding so the per-step stats store is a full, unmasked
    # (8, 128)-tile vst instead of a 2-sublane masked store.
    s1 = jnp.sum(acc, axis=0, keepdims=True)
    s2 = jnp.sum(acc * acc, axis=0, keepdims=True)
    pad = jnp.zeros((6, acc.shape[1]), jnp.float32)
    return jnp.concatenate([s1, s2, pad], axis=0)


def _stats_kernel(p_ref, w_ref, stats_ref):
    # Pass 1 of the recompute path: MXU matmul (bf16 in, f32 acc) -> partial BN
    # statistics only.  No M x C_pad intermediate is written to HBM.
    acc = jnp.dot(p_ref[...], w_ref[...], preferred_element_type=jnp.float32)
    stats_ref[0] = _partial_stats(acc)


def _conv_bn_lrelu_kernel(p_ref, w_ref, scale_ref, shift_ref, o_ref, *, slope):
    # Pass 2 of the recompute path: recompute the matmul (bit-identical to the
    # stats pass), apply BatchNorm scale/shift and LeakyReLU, store f32.
    acc = jnp.dot(p_ref[...], w_ref[...], preferred_element_type=jnp.float32)
    y = acc * scale_ref[...] + shift_ref[...]
    o_ref[...] = jnp.where(y >= 0, y, slope * y)


def _conv_stats_kernel(p_ref, w_ref, y_ref, stats_ref):
    # Fallback (large-K) path, pass 1: matmul + partial stats, bf16 intermediate
    # (halves the dominant HBM write vs. the previous f32 intermediate).
    acc = jnp.dot(p_ref[...], w_ref[...], preferred_element_type=jnp.float32)
    y_ref[...] = acc.astype(y_ref.dtype)
    stats_ref[0] = _partial_stats(acc)


def _bn_apply_kernel(y_ref, scale_ref, shift_ref, o_ref, *, slope):
    # Fallback path, pass 2: upcast the bf16 intermediate per tile, apply
    # BatchNorm + LeakyReLU in f32 (VPU-friendly on v5e).
    y = y_ref[...].astype(jnp.float32)
    out = y * scale_ref[...] + shift_ref[...]
    o_ref[...] = jnp.where(out >= 0, out, slope * out)


# ------------------------------ helpers -------------------------------------

def _round_up(x, m):
    return ((x + m - 1) // m) * m


def _pick_tm(m_rows, k_pad, c_pad, out_bytes):
    """Row tile, budgeted against VMEM that actually counts the resident bf16
    weight and the double-buffered patch / output tiles (the old heuristic
    ignored both, plus the per-chip scoped-VMEM limits)."""
    weight_bytes = 2 * (k_pad * c_pad * 2)                   # (K,Cp) bf16, 2 bufs
    row_bytes = 2 * (k_pad * 2) + 2 * (c_pad * out_bytes)    # patch + out, 2 bufs
    avail = max(VMEM_TILE_BUDGET - weight_bytes - (256 << 10), row_bytes * 8)
    cap = int(min(2048, avail // row_bytes))                 # ~HBM-roofline plateau
    cap = max(cap, 8)
    if m_rows <= cap and m_rows < 2048:
        # Small/medium problem: one (or few) full tiles; do NOT force a split
        # (per-step overhead only hurts on single-TC v5e/v6e).
        return _round_up(m_rows, 8)
    # Large problem: MXU-friendly 256-row multiples, and aim for >= 4 grid steps
    # (>= 2 per v7x TensorCore) so both cores stay double-buffered.
    tm = min(cap, max(256, _round_up(pl.cdiv(m_rows, 4), 256)))
    if tm >= 256:
        tm = (tm // 256) * 256
    return max(8, _round_up(tm, 8))


def _im2col_reflect_bf16(x_nhwc_bf16, kh, kw, sh, sw, pad):
    """Reflect-pad then extract (kh,kw) patches with stride (sh,sw), in bf16."""
    xp = jnp.pad(x_nhwc_bf16, ((0, 0), (pad, pad), (pad, pad), (0, 0)),
                 mode="reflect")
    n, hp, wp, c = xp.shape
    oh = (hp - kh) // sh + 1
    ow = (wp - kw) // sw + 1
    cols = [xp[:, i:i + sh * oh:sh, j:j + sw * ow:sw, :]
            for i in range(kh) for j in range(kw)]
    patches = jnp.stack(cols, axis=3)                 # (N, OH, OW, KH*KW, C)
    return patches.reshape(n * oh * ow, kh * kw * c), (n, oh, ow)


# ------------------------------ forward --------------------------------------

@functools.partial(jax.jit, static_argnames=("stride", "eps", "slope"))
def cnn_block_forward(x_nchw, w_oihw, gamma, beta,
                      stride=(2, 2), eps=1e-5, slope=0.2):
    n, cin, h, w = x_nchw.shape
    cout, _, kh, kw = w_oihw.shape
    sh, sw = stride

    # NCHW -> NHWC, bf16 MXU inputs (f32 accumulation in-kernel).
    x = jnp.transpose(x_nchw, (0, 2, 3, 1)).astype(jnp.bfloat16)
    patches, (n_, oh, ow) = _im2col_reflect_bf16(x, kh, kw, sh, sw, pad=1)
    m_rows, k = patches.shape

    # Lane-dense output channels and lane-dense K (zero padding is free
    # correctness-wise and keeps every vld / MXU pass unmasked).
    c_pad = max(LANE, _round_up(cout, LANE))
    k_pad = max(LANE, _round_up(k, LANE))

    # PyTorch weight (Cout, Cin, KH, KW) -> (K_pad, C_pad); column order matches
    # the im2col layout ((i*KW + j)*Cin + c).
    w_mat = jnp.transpose(w_oihw, (2, 3, 1, 0)).reshape(k, cout)
    w_mat = jnp.pad(w_mat, ((0, k_pad - k), (0, c_pad - cout))).astype(jnp.bfloat16)
    if k_pad != k:
        patches = jnp.pad(patches, ((0, 0), (0, k_pad - k)))

    # Row tiling: cdiv grid + zero-row padding (padded rows contribute exact
    # zeros to the statistics, so no masking is needed).
    tm = _pick_tm(m_rows, k_pad, c_pad, out_bytes=4)
    grid_m = pl.cdiv(m_rows, tm)
    m_pad = grid_m * tm
    if m_pad != m_rows:
        patches = jnp.pad(patches, ((0, m_pad - m_rows), (0, 0)))

    cparams = pltpu.CompilerParams(dimension_semantics=("parallel",),
                                   vmem_limit_bytes=VMEM_LIMIT_BYTES)

    # Recompute gate: re-reading the bf16 patches (2*K_pad bytes/row) is cheaper
    # than writing + reading a bf16 M x C_pad intermediate (4*C_pad bytes/row).
    recompute = (2 * k_pad) <= (4 * c_pad)

    if recompute:
        # ---- Pass 1: matmul -> partial BN statistics only (no intermediate) --
        part_stats = pl.pallas_call(
            _stats_kernel,
            out_shape=jax.ShapeDtypeStruct((grid_m, 8, c_pad), jnp.float32),
            grid_spec=pltpu.PrefetchScalarGridSpec(
                num_scalar_prefetch=0, grid=(grid_m,),
                in_specs=[pl.BlockSpec((tm, k_pad), lambda i: (i, 0)),
                          pl.BlockSpec((k_pad, c_pad), lambda i: (0, 0))],
                out_specs=pl.BlockSpec((1, 8, c_pad), lambda i: (i, 0, 0))),
            compiler_params=cparams,
        )(patches, w_mat)
        conv_bf16 = None
    else:
        # ---- Fallback pass 1: matmul + stats, bf16 intermediate ---------------
        conv_bf16, part_stats = pl.pallas_call(
            _conv_stats_kernel,
            out_shape=(jax.ShapeDtypeStruct((m_pad, c_pad), jnp.bfloat16),
                       jax.ShapeDtypeStruct((grid_m, 8, c_pad), jnp.float32)),
            grid_spec=pltpu.PrefetchScalarGridSpec(
                num_scalar_prefetch=0, grid=(grid_m,),
                in_specs=[pl.BlockSpec((tm, k_pad), lambda i: (i, 0)),
                          pl.BlockSpec((k_pad, c_pad), lambda i: (0, 0))],
                out_specs=(pl.BlockSpec((tm, c_pad), lambda i: (i, 0)),
                           pl.BlockSpec((1, 8, c_pad), lambda i: (i, 0, 0)))),
            compiler_params=cparams,
        )(patches, w_mat)

    # ---- Finalize training-mode batch statistics (tiny reduction in XLA) -----
    # NOTE: var = E[x^2] - mean^2 in f32; acceptable here, clamped at 0.  A
    # mean-shifted sum-of-squares would be tighter if needed.
    stats = jnp.sum(part_stats, axis=0)               # (8, C_pad); rows 0/1 used
    inv_m = 1.0 / float(m_rows)
    mean = stats[0] * inv_m
    var = jnp.maximum(stats[1] * inv_m - mean * mean, 0.0)   # biased (training)
    inv = jax.lax.rsqrt(var + eps)
    gamma_p = jnp.pad(gamma.astype(jnp.float32), (0, c_pad - cout))
    beta_p = jnp.pad(beta.astype(jnp.float32), (0, c_pad - cout))
    scale = (gamma_p * inv).reshape(1, c_pad)
    shift = (beta_p - mean * gamma_p * inv).reshape(1, c_pad)

    if recompute:
        # ---- Pass 2: recompute matmul, fused BN-apply + LeakyReLU ------------
        out = pl.pallas_call(
            functools.partial(_conv_bn_lrelu_kernel, slope=slope),
            out_shape=jax.ShapeDtypeStruct((m_pad, c_pad), jnp.float32),
            grid_spec=pltpu.PrefetchScalarGridSpec(
                num_scalar_prefetch=0, grid=(grid_m,),
                in_specs=[pl.BlockSpec((tm, k_pad), lambda i: (i, 0)),
                          pl.BlockSpec((k_pad, c_pad), lambda i: (0, 0)),
                          pl.BlockSpec((1, c_pad), lambda i: (0, 0)),
                          pl.BlockSpec((1, c_pad), lambda i: (0, 0))],
                out_specs=pl.BlockSpec((tm, c_pad), lambda i: (i, 0))),
            compiler_params=cparams,
        )(patches, w_mat, scale, shift)
    else:
        # ---- Fallback pass 2: BN-apply + LeakyReLU on the bf16 intermediate ---
        # Decouple the apply-row tile from the conv tm: the apply pass is pure
        # HBM-roofline elementwise work, so take the largest divisor-multiple
        # of tm that stays <= 2048 rows and inside the VMEM budget.
        mult = 1
        for cand in range(grid_m, 0, -1):
            if (grid_m % cand == 0 and tm * cand <= 2048
                    and 12 * c_pad * tm * cand <= VMEM_TILE_BUDGET):
                mult = cand
                break
        tm_apply = tm * mult
        grid_apply = grid_m // mult
        out = pl.pallas_call(
            functools.partial(_bn_apply_kernel, slope=slope),
            out_shape=jax.ShapeDtypeStruct((m_pad, c_pad), jnp.float32),
            grid_spec=pltpu.PrefetchScalarGridSpec(
                num_scalar_prefetch=0, grid=(grid_apply,),
                in_specs=[pl.BlockSpec((tm_apply, c_pad), lambda i: (i, 0)),
                          pl.BlockSpec((1, c_pad), lambda i: (0, 0)),
                          pl.BlockSpec((1, c_pad), lambda i: (0, 0))],
                out_specs=pl.BlockSpec((tm_apply, c_pad), lambda i: (i, 0))),
            compiler_params=cparams,
        )(conv_bf16, scale, shift)

    # Strip row/lane padding, back to NCHW (PyTorch layout).  This stays in XLA:
    # writing NCHW directly would force masked, non-lane-dense kernel stores.
    out = out[:m_rows, :cout].reshape(n_, oh, ow, cout)
    return jnp.transpose(out, (0, 3, 1, 2))


# ------------------------------ reference -----------------------------------

def _reference(x_nchw, w_oihw, gamma, beta, stride=(2, 2), eps=1e-5, slope=0.2):
    # Matches the kernel's MXU precision: bf16 conv inputs, f32 accumulation,
    # f32 BatchNorm (training-mode batch stats) + LeakyReLU.
    x = jnp.transpose(x_nchw, (0, 2, 3, 1)).astype(jnp.bfloat16)
    xp = jnp.pad(x, ((0, 0), (1, 1), (1, 1), (0, 0)), mode="reflect")
    y = jax.lax.conv_general_dilated(
        xp, w_oihw.astype(jnp.bfloat16), window_strides=stride, padding="VALID",
        dimension_numbers=("NHWC", "OIHW", "NHWC"),
        preferred_element_type=jnp.float32)
    mean = jnp.mean(y, axis=(0, 1, 2), keepdims=True)
    var = jnp.mean((y - mean) ** 2, axis=(0, 1, 2), keepdims=True)
    y = (y - mean) * jax.lax.rsqrt(var + eps) * gamma + beta
    y = jnp.where(y >= 0, y, slope * y)
    return jnp.transpose(y, (0, 3, 1, 2))


# ------------------------------ main -----------------------------------------

if __name__ == "__main__":
    key = jax.random.PRNGKey(0)
    k_x, k_w = jax.random.split(key)

    N, Cin, H, W = 2, 4, 16, 16
    Cout = 8

    x = jax.random.normal(k_x, (N, Cin, H, W), dtype=jnp.float32)
    w = jax.random.normal(k_w, (Cout, Cin, 4, 4), dtype=jnp.float32) * 0.05
    gamma = jnp.ones((Cout,), dtype=jnp.float32)    # BatchNorm2d default init
    beta = jnp.zeros((Cout,), dtype=jnp.float32)

    out = jax.block_until_ready(cnn_block_forward(x, w, gamma, beta))

    ref = _reference(x, w, gamma, beta)
    assert out.shape == (N, Cout, H // 2, W // 2), out.shape
    max_err = jnp.max(jnp.abs(out - ref))
    assert jnp.allclose(out, ref, atol=2e-3, rtol=2e-3), f"max abs err {max_err}"

    print("KERNEL_OK")
</pallas_src>

<mosaic_0001>
module attributes {stable_mosaic.version = 11 : i64} {
  func.func @_stats_kernel(%arg0: i32, %arg1: memref<128x128xbf16, #tpu.memory_space<vmem>>, %arg2: memref<128x128xbf16, #tpu.memory_space<vmem>>, %arg3: memref<1x8x128xf32, #tpu.memory_space<vmem>>) attributes {dimension_semantics = [#tpu.dimension_semantics<parallel>], iteration_bounds = array<i64: 1>, scalar_prefetch = 0 : i64, scratch_operands = 0 : i64, tpu.core_type = #tpu.core_type<tc>, window_params = [{transform_indices = @transform_0, window_bounds = array<i64: 128, 128>}, {pipeline_mode = #tpu.pipeline_mode<synchronous>, transform_indices = @transform_1, window_bounds = array<i64: 128, 128>}, {transform_indices = @transform_2, window_bounds = array<i64: 1, 8, 128>}]} {
    %c0 = arith.constant 0 : index
    %c0_0 = arith.constant 0 : index
    %0 = vector.load %arg1[%c0, %c0_0] : memref<128x128xbf16, #tpu.memory_space<vmem>>, vector<128x128xbf16>
    %c0_1 = arith.constant 0 : index
    %c0_2 = arith.constant 0 : index
    %1 = vector.load %arg2[%c0_1, %c0_2] : memref<128x128xbf16, #tpu.memory_space<vmem>>, vector<128x128xbf16>
    %cst = arith.constant dense<0.000000e+00> : vector<128x128xf32>
    %2 = tpu.matmul %0, %1, %cst {dimension_numbers = #tpu.dot_dimension_numbers<[1], [0], [0], [1], [0, 0, 1, 1], [], []>} : vector<128x128xbf16>, vector<128x128xbf16>, vector<128x128xf32> -> vector<128x128xf32>
    %cst_3 = arith.constant dense<0.000000e+00> : vector<128xf32>
    %3 = vector.multi_reduction <add>, %2, %cst_3 [0] : vector<128x128xf32> to vector<128xf32>
    %4 = vector.shape_cast %3 : vector<128xf32> to vector<1x128xf32>
    %5 = arith.mulf %2, %2 : vector<128x128xf32>
    %cst_4 = arith.constant dense<0.000000e+00> : vector<128xf32>
    %6 = vector.multi_reduction <add>, %5, %cst_4 [0] : vector<128x128xf32> to vector<128xf32>
    %7 = vector.shape_cast %6 : vector<128xf32> to vector<1x128xf32>
    %cst_5 = arith.constant 0.000000e+00 : f32
    %8 = vector.broadcast %cst_5 : f32 to vector<6x128xf32>
    %9 = tpu.concatenate %4, %7, %8 in 0 : vector<1x128xf32>, vector<1x128xf32>, vector<6x128xf32> -> vector<8x128xf32>
    %c0_6 = arith.constant 0 : index
    %c0_7 = arith.constant 0 : index
    %c0_8 = arith.constant 0 : index
    %10 = vector.load %arg3[%c0_6, %c0_7, %c0_8] : memref<1x8x128xf32, #tpu.memory_space<vmem>>, vector<1x8x128xf32>
    %11 = vector.shape_cast %10 : vector<1x8x128xf32> to vector<8x128xf32>
    %12 = vector.shape_cast %9 : vector<8x128xf32> to vector<1x8x128xf32>
    tpu.vector_store %arg3[%c0_6, %c0_7, %c0_8], %12 {strides = array<i32>} : memref<1x8x128xf32, #tpu.memory_space<vmem>>, vector<1x8x128xf32>,
    return
  }
  func.func @transform_0(%arg0: i32) -> (i32, i32) {
    %c0_i32 = arith.constant 0 : i32
    %c0_i32_0 = arith.constant 0 : i32
    return %arg0, %c0_i32 : i32, i32
  }
  func.func @transform_1(%arg0: i32) -> (i32, i32) {
    %c0_i32 = arith.constant 0 : i32
    %c0_i32_0 = arith.constant 0 : i32
    %c0_i32_1 = arith.constant 0 : i32
    return %c0_i32, %c0_i32_0 : i32, i32
  }
  func.func @transform_2(%arg0: i32) -> (i32, i32, i32) {
    %c0_i32 = arith.constant 0 : i32
    %c0_i32_0 = arith.constant 0 : i32
    %c0_i32_1 = arith.constant 0 : i32
    return %arg0, %c0_i32, %c0_i32_0 : i32, i32, i32
  }
}

module attributes {stable_mosaic.version = 11 : i64} {
  func.func @_conv_bn_lrelu_kernel(%arg0: i32, %arg1: memref<128x128xbf16, #tpu.memory_space<vmem>>, %arg2: memref<128x128xbf16, #tpu.memory_space<vmem>>, %arg3: memref<1x128xf32, #tpu.memory_space<vmem>>, %arg4: memref<1x128xf32, #tpu.memory_space<vmem>>, %arg5: memref<128x128xf32, #tpu.memory_space<vmem>>) attributes {dimension_semantics = [#tpu.dimension_semantics<parallel>], iteration_bounds = array<i64: 1>, scalar_prefetch = 0 : i64, scratch_operands = 0 : i64, tpu.core_type = #tpu.core_type<tc>, window_params = [{transform_indices = @transform_0, window_bounds = array<i64: 128, 128>}, {pipeline_mode = #tpu.pipeline_mode<synchronous>, transform_indices = @transform_1, window_bounds = array<i64: 128, 128>}, {pipeline_mode = #tpu.pipeline_mode<synchronous>, transform_indices = @transform_2, window_bounds = array<i64: 1, 128>}, {pipeline_mode = #tpu.pipeline_mode<synchronous>, transform_indices = @transform_3, window_bounds = array<i64: 1, 128>}, {transform_indices = @transform_4, window_bounds = array<i64: 128, 128>}]} {
    %c0 = arith.constant 0 : index
    %c0_0 = arith.constant 0 : index
    %0 = vector.load %arg1[%c0, %c0_0] : memref<128x128xbf16, #tpu.memory_space<vmem>>, vector<128x128xbf16>
    %c0_1 = arith.constant 0 : index
    %c0_2 = arith.constant 0 : index
    %1 = vector.load %arg2[%c0_1, %c0_2] : memref<128x128xbf16, #tpu.memory_space<vmem>>, vector<128x128xbf16>
    %cst = arith.constant dense<0.000000e+00> : vector<128x128xf32>
    %2 = tpu.matmul %0, %1, %cst {dimension_numbers = #tpu.dot_dimension_numbers<[1], [0], [0], [1], [0, 0, 1, 1], [], []>} : vector<128x128xbf16>, vector<128x128xbf16>, vector<128x128xf32> -> vector<128x128xf32>
    %c0_3 = arith.constant 0 : index
    %c0_4 = arith.constant 0 : index
    %3 = vector.load %arg3[%c0_3, %c0_4] : memref<1x128xf32, #tpu.memory_space<vmem>>, vector<1x128xf32>
    %4 = vector.broadcast %3 : vector<1x128xf32> to vector<128x128xf32>
    %5 = arith.mulf %2, %4 : vector<128x128xf32>
    %c0_5 = arith.constant 0 : index
    %c0_6 = arith.constant 0 : index
    %6 = vector.load %arg4[%c0_5, %c0_6] : memref<1x128xf32, #tpu.memory_space<vmem>>, vector<1x128xf32>
    %7 = vector.broadcast %6 : vector<1x128xf32> to vector<128x128xf32>
    %8 = arith.addf %5, %7 : vector<128x128xf32>
    %cst_7 = arith.constant 0.000000e+00 : f32
    %9 = vector.broadcast %cst_7 : f32 to vector<128x128xf32>
    %10 = arith.cmpf oge, %8, %9 : vector<128x128xf32>
    %cst_8 = arith.constant 2.000000e-01 : f32
    %11 = vector.broadcast %cst_8 : f32 to vector<128x128xf32>
    %12 = arith.mulf %11, %8 : vector<128x128xf32>
    %13 = arith.select %10, %8, %12 : vector<128x128xi1>, vector<128x128xf32>
    %c0_9 = arith.constant 0 : index
    %c0_10 = arith.constant 0 : index
    %14 = vector.load %arg5[%c0_9, %c0_10] : memref<128x128xf32, #tpu.memory_space<vmem>>, vector<128x128xf32>
    tpu.vector_store %arg5[%c0_9, %c0_10], %13 {strides = array<i32>} : memref<128x128xf32, #tpu.memory_space<vmem>>, vector<128x128xf32>,
    return
  }
  func.func @transform_0(%arg0: i32) -> (i32, i32) {
    %c0_i32 = arith.constant 0 : i32
    %c0_i32_0 = arith.constant 0 : i32
    return %arg0, %c0_i32 : i32, i32
  }
  func.func @transform_1(%arg0: i32) -> (i32, i32) {
    %c0_i32 = arith.constant 0 : i32
    %c0_i32_0 = arith.constant 0 : i32
    %c0_i32_1 = arith.constant 0 : i32
    return %c0_i32, %c0_i32_0 : i32, i32
  }
  func.func @transform_2(%arg0: i32) -> (i32, i32) {
    %c0_i32 = arith.constant 0 : i32
    %c0_i32_0 = arith.constant 0 : i32
    %c0_i32_1 = arith.constant 0 : i32
    return %c0_i32, %c0_i32_0 : i32, i32
  }
  func.func @transform_3(%arg0: i32) -> (i32, i32) {
    %c0_i32 = arith.constant 0 : i32
    %c0_i32_0 = arith.constant 0 : i32
    %c0_i32_1 = arith.constant 0 : i32
    return %c0_i32, %c0_i32_0 : i32, i32
  }
  func.func @transform_4(%arg0: i32) -> (i32, i32) {
    %c0_i32 = arith.constant 0 : i32
    %c0_i32_0 = arith.constant 0 : i32
    return %arg0, %c0_i32 : i32, i32
  }
}

</mosaic_0001>

<bundles_post_ra>
// kernel: cnn_block_forward.2
= control target key start
LH: loop header
LB: loop body
LE: loop exit
PB: predicated region body
PF: predicated region fallthrough
CT: control target
= control target key end

     0   :  { %vm246_vm0 = vcmask 1040384   ;;  %vm248_vm1 = vcmask 1041408   ;;  %s425_s1 = inlined_call_operand.vmem [shape: bf16[128,128], index: 1, kind: input, shape index: {}]   ;;  %s426_s0 = inlined_call_operand.vmem [shape: bf16[128,128], index: 0, kind: input, shape index: {}]   ;;  %s427_s2 = inlined_call_operand.vmem [shape: f32[1,8,128], index: 2, kind: output, shape index: {}]  }
   0x1   :  { %v334_v0 = vld [vmem:[%s425_s1 + $0x38] sm:$0xff]  ;;  %v333_v1 = vld [vmem:[%s425_s1 + $0x30] sm:$0xff]  ;;  %v332_v2 = vld [vmem:[%s425_s1 + $0x28] sm:$0xff] }
   0x2   :  { %139 = vmatpush.bf16.msra.mxu0 %v334_v0  ;;  %335 = vmatpush.bf16.msra.mxu1 %v334_v0  ;;  %v331_v3 = vld [vmem:[%s425_s1 + $0x20] sm:$0xff]  ;;  %v330_v4 = vld [vmem:[%s425_s1 + $0x18] sm:$0xff]  ;;  %v329_v5 = vld [vmem:[%s425_s1 + $0x10] sm:$0xff] }
   0x3   :  { %336 = vmatpush.bf16.msra.mxu2 %v334_v0  ;;  %337 = vmatpush.bf16.msra.mxu3 %v334_v0  ;;  %v328_v6 = vld [vmem:[%s425_s1 + $0x8] sm:$0xff]  ;;  %v327_v7 = vld [vmem:[%s425_s1] sm:$0xff]  ;;  %v321_v9 = vld [vmem:[%s426_s0 + $0x10] sm:$0xff] }
   0x4   :  { %v319_v8 = vld [vmem:[%s426_s0] sm:$0xff]  ;;  %v325_v11 = vld [vmem:[%s426_s0 + $0x30] sm:$0xff]  ;;  %v320_v12 = vld [vmem:[%s426_s0 + $0x8] sm:$0xff] }
   0x5   :  { %v323_v10 = vld [vmem:[%s426_s0 + $0x20] sm:$0xff]  ;;  %v322_v13 = vld [vmem:[%s426_s0 + $0x18] sm:$0xff]  ;;  %v324_v14 = vld [vmem:[%s426_s0 + $0x28] sm:$0xff] }
   0x6   :  { %140 = vmatpush.bf16.msra.mxu0 %v333_v1  ;;  %338 = vmatpush.bf16.msra.mxu1 %v333_v1  ;;  %v326_v15 = vld [vmem:[%s426_s0 + $0x38] sm:$0xff] }
   0x7   :  { %339 = vmatpush.bf16.msra.mxu2 %v333_v1  ;;  %340 = vmatpush.bf16.msra.mxu3 %v333_v1 }
   0xa   :  { %141 = vmatpush.bf16.msra.mxu0 %v332_v2  ;;  %341 = vmatpush.bf16.msra.mxu1 %v332_v2 }
   0xb   :  { %342 = vmatpush.bf16.msra.mxu2 %v332_v2  ;;  %343 = vmatpush.bf16.msra.mxu3 %v332_v2 }
   0xe   :  { %142 = vmatpush.bf16.msra.mxu0 %v331_v3  ;;  %344 = vmatpush.bf16.msra.mxu1 %v331_v3 }
   0xf   :  { %345 = vmatpush.bf16.msra.mxu2 %v331_v3  ;;  %346 = vmatpush.bf16.msra.mxu3 %v331_v3 }
  0x12   :  { %143 = vmatpush.bf16.msra.mxu0 %v330_v4  ;;  %347 = vmatpush.bf16.msra.mxu1 %v330_v4 }
  0x13   :  { %348 = vmatpush.bf16.msra.mxu2 %v330_v4  ;;  %349 = vmatpush.bf16.msra.mxu3 %v330_v4 }
  0x16   :  { %144 = vmatpush.bf16.msra.mxu0 %v329_v5  ;;  %350 = vmatpush.bf16.msra.mxu1 %v329_v5 }
  0x17   :  { %351 = vmatpush.bf16.msra.mxu2 %v329_v5  ;;  %352 = vmatpush.bf16.msra.mxu3 %v329_v5 }
  0x1a   :  { %145 = vmatpush.bf16.msra.mxu0 %v328_v6  ;;  %353 = vmatpush.bf16.msra.mxu1 %v328_v6 }
  0x1b   :  { %354 = vmatpush.bf16.msra.mxu2 %v328_v6  ;;  %355 = vmatpush.bf16.msra.mxu3 %v328_v6 }
  0x1e   :  { %146 = vmatpush.bf16.msra.mxu0 %v327_v7  ;;  %356 = vmatpush.bf16.msra.mxu1 %v327_v7 }
  0x1f   :  { %357 = vmatpush.bf16.msra.mxu2 %v327_v7  ;;  %358 = vmatpush.bf16.msra.mxu3 %v327_v7 }
  0x21   :  { %147 = vmatmul.bf16.vlgmr.msra.gmra.mxu0 %v319_v8  ;;  %157 = vmatmul.bf16.vlgmr.msra.gmra.mxu1 %v321_v9 }
  0x22   :  { %167 = vmatmul.bf16.vlgmr.msra.gmra.mxu2 %v323_v10  ;;  %177 = vmatmul.bf16.vlgmr.msra.gmra.mxu3 %v325_v11 }
  0x31   :  { %152 = vmatmul.bf16.gmra.mxu0 %v320_v12  ;;  %162 = vmatmul.bf16.gmra.mxu1 %v322_v13 }
  0x32   :  { %172 = vmatmul.bf16.gmra.mxu2 %v324_v14  ;;  %182 = vmatmul.bf16.gmra.mxu3 %v326_v15 }
  0x9e   :  { %v148_v16 = vpop.f32.mrf.mxu0  ;;  %v158_v17 = vpop.f32.mrf.mxu1 }
  0x9f   :  { %v209_v26 = vmul.f32 %v148_v16, %v148_v16  ;;  %v213_v36 = vmul.f32 %v158_v17, %v158_v17 }
  0xa5   :  { %v168_v19 = vpop.f32.mrf.mxu2  ;;  %v178_v22 = vpop.f32.mrf.mxu3 }
  0xa6   :  { %v150_v18 = vpop.f32.mrf.mxu0  ;;  %v160_v20 = vpop.f32.mrf.mxu1  ;;  %v217_v50 = vmul.f32 %v168_v19, %v168_v19  ;;  %v221_v0 = vmul.f32 %v178_v22, %v178_v22 }
  0xa7   :  { %v210_v24 = vmul.f32 %v150_v18, %v150_v18  ;;  %v188_v27 = vadd.f32 %v150_v18, %v148_v16  ;;  %v214_v40 = vmul.f32 %v160_v20, %v160_v20 }
  0xa9   :  { %v225_v29 = vadd.f32 %v210_v24, %v209_v26 }
  0xad   :  { %v170_v23 = vpop.f32.mrf.mxu2  ;;  %v180_v35 = vpop.f32.mrf.mxu3 }
  0xae   :  { %v153_v21 = vpop.f32.mrf.mxu0  ;;  %v163_v25 = vpop.f32.mrf.mxu1  ;;  %v218_v54 = vmul.f32 %v170_v23, %v170_v23  ;;  %v222_v3 = vmul.f32 %v180_v35, %v180_v35 }
  0xaf   :  { %v211_v28 = vmul.f32 %v153_v21, %v153_v21  ;;  %v189_v30 = vadd.f32 %v188_v27, %v153_v21  ;;  %v215_v44 = vmul.f32 %v163_v25, %v163_v25 }
  0xb1   :  { %v226_v32 = vadd.f32 %v225_v29, %v211_v28 }
  0xb5   :  { %v173_v39 = vpop.f32.mrf.mxu2  ;;  %v183_v53 = vpop.f32.mrf.mxu3 }
  0xb6   :  { %v155_v31 = vpop.f32.mrf.mxu0  ;;  %v165_v43 = vpop.f32.mrf.mxu1  ;;  %v219_v59 = vmul.f32 %v173_v39, %v173_v39  ;;  %v223_v8 = vmul.f32 %v183_v53, %v183_v53 }
  0xb7   :  { %v190_v33 = vadd.f32 %v189_v30, %v155_v31  ;;  %v212_v34 = vmul.f32 %v155_v31, %v155_v31  ;;  %v216_v48 = vmul.f32 %v165_v43, %v165_v43 }
  0xb9   :  { %v191_v37 = vadd.f32 %v190_v33, %v158_v17  ;;  %v227_v38 = vadd.f32 %v226_v32, %v212_v34 }
  0xbb   :  { %v228_v41 = vadd.f32 %v227_v38, %v213_v36  ;;  %v192_v42 = vadd.f32 %v191_v37, %v160_v20 }
  0xbd   :  { %v193_v45 = vadd.f32 %v192_v42, %v163_v25  ;;  %v229_v46 = vadd.f32 %v228_v41, %v214_v40  ;;  %v175_v57 = vpop.f32.mrf.mxu2  ;;  %v185_v6 = vpop.f32.mrf.mxu3 }
  0xbe   :  { %v220_v63 = vmul.f32 %v175_v57, %v175_v57  ;;  %v224_v12 = vmul.f32 %v185_v6, %v185_v6 }
  0xbf   :  { %v194_v47 = vadd.f32 %v193_v45, %v165_v43  ;;  %v230_v49 = vadd.f32 %v229_v46, %v215_v44 }
  0xc1   :  { %v195_v51 = vadd.f32 %v194_v47, %v168_v19  ;;  %v231_v52 = vadd.f32 %v230_v49, %v216_v48 }
  0xc3   :  { %v232_v55 = vadd.f32 %v231_v52, %v217_v50  ;;  %v196_v56 = vadd.f32 %v195_v51, %v170_v23 }
  0xc5   :  { %v197_v58 = vadd.f32 %v196_v56, %v173_v39  ;;  %v233_v60 = vadd.f32 %v232_v55, %v218_v54 }
  0xc7   :  { %v234_v61 = vadd.f32 %v233_v60, %v219_v59  ;;  %v198_v62 = vadd.f32 %v197_v58, %v175_v57 }
  0xc9   :  { %v199_v1 = vadd.f32 %v198_v62, %v178_v22  ;;  %v235_v2 = vadd.f32 %v234_v61, %v220_v63 }
  0xcb   :  { %v236_v4 = vadd.f32 %v235_v2, %v221_v0  ;;  %v200_v5 = vadd.f32 %v199_v1, %v180_v35 }
  0xcd   :  { %v201_v7 = vadd.f32 %v200_v5, %v183_v53  ;;  %v237_v9 = vadd.f32 %v236_v4, %v222_v3 }
  0xcf   :  { %v238_v10 = vadd.f32 %v237_v9, %v223_v8  ;;  %v202_v11 = vadd.f32 %v201_v7, %v185_v6 }
  0xd1   :  { %v203_v13 = vrot.slane %v202_v11, 4  ;;  %v239_v14 = vadd.f32 %v238_v10, %v224_v12 }
  0xd3   :  { %v204_v15 = vadd.f32 %v203_v13, %v202_v11  ;;  %v240_v16 = vrot.slane %v239_v14, 4 }
  0xd5   :  { %v205_v17 = vrot.slane %v204_v15, 2  ;;  %v241_v18 = vadd.f32 %v240_v16, %v239_v14 }
  0xd7   :  { %v206_v19 = vadd.f32 %v205_v17, %v204_v15  ;;  %v242_v20 = vrot.slane %v241_v18, 2 }
  0xd9   :  { %v207_v21 = vrot.slane %v206_v19, 1  ;;  %v243_v22 = vadd.f32 %v242_v20, %v241_v18 }
  0xdb   :  { %v244_v23 = vrot.slane %v243_v22, 1  ;;  %v208_v24 = vadd.f32 %v207_v21, %v206_v19 }
  0xdd   :  { %v245_v25 = vadd.f32 %v244_v23, %v243_v22 }
  0xdf   :  { %v247_v26 = vsel %vm246_vm0, %v208_v24, %v245_v25 }
  0xe0   :  { %v249_v27 = vsel %vm248_vm1, %v247_v26, 0.0 }
  0xe1   :  { %250 = vst [vmem:[%s427_s2] sm:$0xff] %v249_v27 }

// kernel: cnn_block_forward.3
= control target key start
LH: loop header
LB: loop body
LE: loop exit
PB: predicated region body
PF: predicated region fallthrough
CT: control target
= control target key end

     0   :  { %s571_s1 = inlined_call_operand.vmem [shape: bf16[128,128], index: 1, kind: input, shape index: {}]   ;;  %s572_s2 = inlined_call_operand.vmem [shape: f32[1,128], index: 2, kind: input, shape index: {}]   ;;  %s573_s3 = inlined_call_operand.vmem [shape: f32[1,128], index: 3, kind: input, shape index: {}]   ;;  %s574_s0 = inlined_call_operand.vmem [shape: bf16[128,128], index: 0, kind: input, shape index: {}]   ;;  %s575_s4 = inlined_call_operand.vmem [shape: f32[128,128], index: 4, kind: output, shape index: {}]  }
   0x1   :  { %v381_v0 = vld [vmem:[%s571_s1 + $0x38] sm:$0xff]  ;;  %v380_v1 = vld [vmem:[%s571_s1 + $0x30] sm:$0xff]  ;;  %v379_v2 = vld [vmem:[%s571_s1 + $0x28] sm:$0xff] }
   0x2   :  { %145 = vmatpush.bf16.msra.mxu0 %v381_v0  ;;  %382 = vmatpush.bf16.msra.mxu1 %v381_v0  ;;  %v378_v3 = vld [vmem:[%s571_s1 + $0x20] sm:$0xff]  ;;  %v377_v4 = vld [vmem:[%s571_s1 + $0x18] sm:$0xff]  ;;  %v376_v5 = vld [vmem:[%s571_s1 + $0x10] sm:$0xff] }
   0x3   :  { %383 = vmatpush.bf16.msra.mxu2 %v381_v0  ;;  %384 = vmatpush.bf16.msra.mxu3 %v381_v0  ;;  %v375_v6 = vld [vmem:[%s571_s1 + $0x8] sm:$0xff]  ;;  %v374_v7 = vld [vmem:[%s571_s1] sm:$0xff]  ;;  %v368_v9 = vld [vmem:[%s574_s0 + $0x10] sm:$0xff] }
   0x4   :  { %v366_v8 = vld [vmem:[%s574_s0] sm:$0xff]  ;;  %v372_v11 = vld [vmem:[%s574_s0 + $0x30] sm:$0xff]  ;;  %v367_v12 = vld [vmem:[%s574_s0 + $0x8] sm:$0xff] }
   0x5   :  { %v370_v10 = vld [vmem:[%s574_s0 + $0x20] sm:$0xff]  ;;  %v369_v13 = vld [vmem:[%s574_s0 + $0x18] sm:$0xff]  ;;  %v371_v14 = vld [vmem:[%s574_s0 + $0x28] sm:$0xff] }
   0x6   :  { %146 = vmatpush.bf16.msra.mxu0 %v380_v1  ;;  %385 = vmatpush.bf16.msra.mxu1 %v380_v1  ;;  %v373_v15 = vld [vmem:[%s574_s0 + $0x38] sm:$0xff]  ;;  %v484_v16 = vld [vmem:[%s572_s2] ss:$0 sm:$0xff] }
   0x7   :  { %386 = vmatpush.bf16.msra.mxu2 %v380_v1  ;;  %387 = vmatpush.bf16.msra.mxu3 %v380_v1  ;;  %v489_v17 = vld [vmem:[%s573_s3] ss:$0 sm:$0xff] }
   0xa   :  { %147 = vmatpush.bf16.msra.mxu0 %v379_v2  ;;  %388 = vmatpush.bf16.msra.mxu1 %v379_v2 }
   0xb   :  { %389 = vmatpush.bf16.msra.mxu2 %v379_v2  ;;  %390 = vmatpush.bf16.msra.mxu3 %v379_v2 }
   0xe   :  { %148 = vmatpush.bf16.msra.mxu0 %v378_v3  ;;  %391 = vmatpush.bf16.msra.mxu1 %v378_v3 }
   0xf   :  { %392 = vmatpush.bf16.msra.mxu2 %v378_v3  ;;  %393 = vmatpush.bf16.msra.mxu3 %v378_v3 }
  0x12   :  { %149 = vmatpush.bf16.msra.mxu0 %v377_v4  ;;  %394 = vmatpush.bf16.msra.mxu1 %v377_v4 }
  0x13   :  { %395 = vmatpush.bf16.msra.mxu2 %v377_v4  ;;  %396 = vmatpush.bf16.msra.mxu3 %v377_v4 }
  0x16   :  { %150 = vmatpush.bf16.msra.mxu0 %v376_v5  ;;  %397 = vmatpush.bf16.msra.mxu1 %v376_v5 }
  0x17   :  { %398 = vmatpush.bf16.msra.mxu2 %v376_v5  ;;  %399 = vmatpush.bf16.msra.mxu3 %v376_v5 }
  0x1a   :  { %151 = vmatpush.bf16.msra.mxu0 %v375_v6  ;;  %400 = vmatpush.bf16.msra.mxu1 %v375_v6 }
  0x1b   :  { %401 = vmatpush.bf16.msra.mxu2 %v375_v6  ;;  %402 = vmatpush.bf16.msra.mxu3 %v375_v6 }
  0x1e   :  { %152 = vmatpush.bf16.msra.mxu0 %v374_v7  ;;  %403 = vmatpush.bf16.msra.mxu1 %v374_v7 }
  0x1f   :  { %404 = vmatpush.bf16.msra.mxu2 %v374_v7  ;;  %405 = vmatpush.bf16.msra.mxu3 %v374_v7 }
  0x21   :  { %153 = vmatmul.bf16.vlgmr.msra.gmra.mxu0 %v366_v8  ;;  %163 = vmatmul.bf16.vlgmr.msra.gmra.mxu1 %v368_v9 }
  0x22   :  { %173 = vmatmul.bf16.vlgmr.msra.gmra.mxu2 %v370_v10  ;;  %183 = vmatmul.bf16.vlgmr.msra.gmra.mxu3 %v372_v11 }
  0x31   :  { %158 = vmatmul.bf16.gmra.mxu0 %v367_v12  ;;  %168 = vmatmul.bf16.gmra.mxu1 %v369_v13 }
  0x32   :  { %178 = vmatmul.bf16.gmra.mxu2 %v371_v14  ;;  %188 = vmatmul.bf16.gmra.mxu3 %v373_v15 }
  0x9e   :  { %v154_v18 = vpop.f32.mrf.mxu0  ;;  %v164_v19 = vpop.f32.mrf.mxu1 }
  0x9f   :  { %v198_v20 = vmul.f32 %v484_v16, %v154_v18  ;;  %v202_v21 = vmul.f32 %v484_v16, %v164_v19 }
  0xa1   :  { %v218_v22 = vadd.f32 %v489_v17, %v198_v20  ;;  %v222_v23 = vadd.f32 %v489_v17, %v202_v21 }
  0xa3   :  { %vm234_vm0 = vcmp.ge.f32.partialorder %v218_v22, 0.0  ;;  %v250_v24 = vmul.f32 0.2, %v218_v22  ;;  %vm238_vm1 = vcmp.ge.f32.partialorder %v222_v23, 0.0  ;;  %v254_v25 = vmul.f32 0.2, %v222_v23 }
  0xa5   :  { %v266_v26 = vsel %vm234_vm0, %v218_v22, %v250_v24  ;;  %v270_v27 = vsel %vm238_vm1, %v222_v23, %v254_v25  ;;  %v174_v28 = vpop.f32.mrf.mxu2  ;;  %v184_v29 = vpop.f32.mrf.mxu3 }
  0xa6   :  { %282 = vst [vmem:[%s575_s4] sm:$0xff] %v266_v26  ;;  %v206_v30 = vmul.f32 %v484_v16, %v174_v28  ;;  %v210_v31 = vmul.f32 %v484_v16, %v184_v29  ;;  %v156_v32 = vpop.f32.mrf.mxu0  ;;  %v166_v33 = vpop.f32.mrf.mxu1 }
  0xa7   :  { %286 = vst [vmem:[%s575_s4 + $0x20] sm:$0xff] %v270_v27  ;;  %v199_v34 = vmul.f32 %v484_v16, %v156_v32  ;;  %v203_v35 = vmul.f32 %v484_v16, %v166_v33 }
  0xa8   :  { %v226_v36 = vadd.f32 %v489_v17, %v206_v30  ;;  %v230_v37 = vadd.f32 %v489_v17, %v210_v31 }
  0xa9   :  { %v219_v38 = vadd.f32 %v489_v17, %v199_v34  ;;  %v223_v39 = vadd.f32 %v489_v17, %v203_v35 }
  0xaa   :  { %vm242_vm2 = vcmp.ge.f32.partialorder %v226_v36, 0.0  ;;  %v258_v40 = vmul.f32 0.2, %v226_v36  ;;  %vm246_vm3 = vcmp.ge.f32.partialorder %v230_v37, 0.0  ;;  %v262_v41 = vmul.f32 0.2, %v230_v37 }
  0xab   :  { %vm235_vm4 = vcmp.ge.f32.partialorder %v219_v38, 0.0  ;;  %v251_v42 = vmul.f32 0.2, %v219_v38  ;;  %vm239_vm5 = vcmp.ge.f32.partialorder %v223_v39, 0.0  ;;  %v255_v43 = vmul.f32 0.2, %v223_v39 }
  0xac   :  { %v274_v44 = vsel %vm242_vm2, %v226_v36, %v258_v40  ;;  %v278_v45 = vsel %vm246_vm3, %v230_v37, %v262_v41 }
  0xad   :  { %290 = vst [vmem:[%s575_s4 + $0x40] sm:$0xff] %v274_v44  ;;  %v267_v46 = vsel %vm235_vm4, %v219_v38, %v251_v42  ;;  %v271_v47 = vsel %vm239_vm5, %v223_v39, %v255_v43  ;;  %v176_v48 = vpop.f32.mrf.mxu2  ;;  %v186_v49 = vpop.f32.mrf.mxu3 }
  0xae   :  { %294 = vst [vmem:[%s575_s4 + $0x60] sm:$0xff] %v278_v45  ;;  %v207_v50 = vmul.f32 %v484_v16, %v176_v48  ;;  %v211_v51 = vmul.f32 %v484_v16, %v186_v49  ;;  %v159_v52 = vpop.f32.mrf.mxu0  ;;  %v169_v53 = vpop.f32.mrf.mxu1 }
  0xaf   :  { %283 = vst [vmem:[%s575_s4 + $0x8] sm:$0xff] %v267_v46  ;;  %v200_v54 = vmul.f32 %v484_v16, %v159_v52  ;;  %v204_v55 = vmul.f32 %v484_v16, %v169_v53 }
  0xb0   :  { %287 = vst [vmem:[%s575_s4 + $0x28] sm:$0xff] %v271_v47  ;;  %v227_v56 = vadd.f32 %v489_v17, %v207_v50  ;;  %v231_v57 = vadd.f32 %v489_v17, %v211_v51 }
  0xb1   :  { %v220_v58 = vadd.f32 %v489_v17, %v200_v54  ;;  %v224_v59 = vadd.f32 %v489_v17, %v204_v55 }
  0xb2   :  { %vm243_vm6 = vcmp.ge.f32.partialorder %v227_v56, 0.0  ;;  %v259_v60 = vmul.f32 0.2, %v227_v56  ;;  %vm247_vm7 = vcmp.ge.f32.partialorder %v231_v57, 0.0  ;;  %v263_v61 = vmul.f32 0.2, %v231_v57 }
  0xb3   :  { %vm236_vm8 = vcmp.ge.f32.partialorder %v220_v58, 0.0  ;;  %v252_v62 = vmul.f32 0.2, %v220_v58  ;;  %vm240_vm9 = vcmp.ge.f32.partialorder %v224_v59, 0.0  ;;  %v256_v63 = vmul.f32 0.2, %v224_v59 }
  0xb4   :  { %v275_v0 = vsel %vm243_vm6, %v227_v56, %v259_v60  ;;  %v279_v1 = vsel %vm247_vm7, %v231_v57, %v263_v61 }
  0xb5   :  { %291 = vst [vmem:[%s575_s4 + $0x48] sm:$0xff] %v275_v0  ;;  %v268_v2 = vsel %vm236_vm8, %v220_v58, %v252_v62  ;;  %v272_v3 = vsel %vm240_vm9, %v224_v59, %v256_v63  ;;  %v179_v4 = vpop.f32.mrf.mxu2  ;;  %v189_v5 = vpop.f32.mrf.mxu3 }
  0xb6   :  { %295 = vst [vmem:[%s575_s4 + $0x68] sm:$0xff] %v279_v1  ;;  %v208_v6 = vmul.f32 %v484_v16, %v179_v4  ;;  %v212_v7 = vmul.f32 %v484_v16, %v189_v5  ;;  %v161_v8 = vpop.f32.mrf.mxu0  ;;  %v171_v9 = vpop.f32.mrf.mxu1 }
  0xb7   :  { %284 = vst [vmem:[%s575_s4 + $0x10] sm:$0xff] %v268_v2  ;;  %v201_v10 = vmul.f32 %v484_v16, %v161_v8  ;;  %v205_v11 = vmul.f32 %v484_v16, %v171_v9 }
  0xb8   :  { %288 = vst [vmem:[%s575_s4 + $0x30] sm:$0xff] %v272_v3  ;;  %v228_v12 = vadd.f32 %v489_v17, %v208_v6  ;;  %v232_v13 = vadd.f32 %v489_v17, %v212_v7 }
  0xb9   :  { %v221_v14 = vadd.f32 %v489_v17, %v201_v10  ;;  %v225_v15 = vadd.f32 %v489_v17, %v205_v11 }
  0xba   :  { %vm244_vm10 = vcmp.ge.f32.partialorder %v228_v12, 0.0  ;;  %v260_v18 = vmul.f32 0.2, %v228_v12  ;;  %vm248_vm11 = vcmp.ge.f32.partialorder %v232_v13, 0.0  ;;  %v264_v19 = vmul.f32 0.2, %v232_v13 }
  0xbb   :  { %vm237_vm12 = vcmp.ge.f32.partialorder %v221_v14, 0.0  ;;  %v253_v20 = vmul.f32 0.2, %v221_v14  ;;  %vm241_vm13 = vcmp.ge.f32.partialorder %v225_v15, 0.0  ;;  %v257_v21 = vmul.f32 0.2, %v225_v15 }
  0xbc   :  { %v276_v22 = vsel %vm244_vm10, %v228_v12, %v260_v18  ;;  %v280_v23 = vsel %vm248_vm11, %v232_v13, %v264_v19 }
  0xbd   :  { %292 = vst [vmem:[%s575_s4 + $0x50] sm:$0xff] %v276_v22  ;;  %v269_v24 = vsel %vm237_vm12, %v221_v14, %v253_v20  ;;  %v273_v25 = vsel %vm241_vm13, %v225_v15, %v257_v21  ;;  %v181_v26 = vpop.f32.mrf.mxu2  ;;  %v191_v27 = vpop.f32.mrf.mxu3 }
  0xbe   :  { %296 = vst [vmem:[%s575_s4 + $0x70] sm:$0xff] %v280_v23  ;;  %v209_v28 = vmul.f32 %v484_v16, %v181_v26  ;;  %v213_v29 = vmul.f32 %v484_v16, %v191_v27 }
  0xbf   :  { %285 = vst [vmem:[%s575_s4 + $0x18] sm:$0xff] %v269_v24 }
  0xc0   :  { %289 = vst [vmem:[%s575_s4 + $0x38] sm:$0xff] %v273_v25  ;;  %v229_v30 = vadd.f32 %v489_v17, %v209_v28  ;;  %v233_v31 = vadd.f32 %v489_v17, %v213_v29 }
  0xc2   :  { %vm245_vm14 = vcmp.ge.f32.partialorder %v229_v30, 0.0  ;;  %v261_v32 = vmul.f32 0.2, %v229_v30  ;;  %vm249_vm15 = vcmp.ge.f32.partialorder %v233_v31, 0.0  ;;  %v265_v33 = vmul.f32 0.2, %v233_v31 }
  0xc4   :  { %v277_v34 = vsel %vm245_vm14, %v229_v30, %v261_v32  ;;  %v281_v35 = vsel %vm249_vm15, %v233_v31, %v265_v33 }
  0xc5   :  { %293 = vst [vmem:[%s575_s4 + $0x58] sm:$0xff] %v277_v34 }
  0xc6   :  { %297 = vst [vmem:[%s575_s4 + $0x78] sm:$0xff] %v281_v35 }

</bundles_post_ra>
